<compile_context>
chip_gen: v5e
topology: v5e:2x2
jax: 0.10.0
libtpu: 0.0.40
codegen_flags: <defaults>
</compile_context>

<pallas_src>
import math

import jax
import jax.numpy as jnp
from jax.experimental import pallas as pl
from jax.experimental.pallas import tpu as pltpu

_C1 = math.sqrt(2.0 / math.pi)        # sqrt(2/pi)
_C2 = _C1 * 0.044715                  # sqrt(2/pi) * 0.044715

_LANE = 128
_MAX_COLS = 2048
_VMEM_LIMIT_BYTES = 32 * 1024 * 1024    # safe: v5e/v6e have 128 MiB phys, v7x 64 MiB
_SINGLE_BLOCK_BYTES = 4 * 1024 * 1024   # ragged inputs up to this run as one block
_MIN_SPLIT_BYTES = 1 * 1024 * 1024      # below this a 1-step grid is fine


def _gelu_kernel(x_ref, o_ref):
    # f32 intermediate math (v5e has no bf16 VPU/EUP).  Horner form trims VALU
    # ops for the case where v7x's higher HBM BW makes the VPU the binding slot.
    xf = x_ref[...].astype(jnp.float32)
    x2 = xf * xf
    inner = xf * (_C1 + _C2 * x2)
    o_ref[...] = (xf * (0.5 + 0.5 * jnp.tanh(inner))).astype(o_ref.dtype)


_TILE_BYTES_CACHE = None


def _target_tile_bytes():
    """Generation-aware tile budget: bigger tiles on v7x, whose higher HBM BW
    drains a tile faster (per-grid-step overhead is a larger fraction)."""
    global _TILE_BYTES_CACHE
    if _TILE_BYTES_CACHE is None:
        tile = 4 * 1024 * 1024
        try:
            vmem = getattr(pltpu.get_tpu_info(), "vmem_capacity_bytes", None)
            if vmem is not None and vmem <= 64 * 1024 * 1024:   # v7x-class (64 MiB/TC)
                tile = 6 * 1024 * 1024                          # 24 MiB double-buffered in+out
        except Exception:
            pass
        _TILE_BYTES_CACHE = tile
    return _TILE_BYTES_CACHE


def _sublane(dtype):
    # f32 -> 8, bf16/f16 -> 16, int8/fp8 -> 32 (sub-32-bit rows pack along sublanes).
    return max(8, 32 // jnp.dtype(dtype).itemsize)


def _round_up(v, m):
    return ((v + m - 1) // m) * m


def _pick_cols(n):
    """Widest multiple-of-128 column width (<= _MAX_COLS) dividing n, else None."""
    if n % _LANE != 0:
        return None
    for c in range(_MAX_COLS, _LANE - 1, -_LANE):
        if n % c == 0:
            return c
    return _LANE


def _compiler_params():
    return pltpu.CompilerParams(
        dimension_semantics=("parallel",),          # shard row tiles across TCs (v7x megacore)
        vmem_limit_bytes=_VMEM_LIMIT_BYTES,
    )


def _call_tiled_2d(x2d, *, donate=False):
    """Tiled elementwise call over a lane-dense (rows, cols) slab."""
    rows, cols = x2d.shape
    dtype = x2d.dtype
    itemsize = jnp.dtype(dtype).itemsize
    sub = _sublane(dtype)
    total_bytes = rows * cols * itemsize

    target_rows = max(sub, _target_tile_bytes() // (cols * itemsize))
    target_rows = (target_rows // sub) * sub

    if target_rows >= rows:
        tr = rows
        # Cap the tile so the grid has >= 2 steps for mid-size inputs so both
        # v7x TensorCores stream data under "parallel" semantics.
        if rows > sub and total_bytes >= _MIN_SPLIT_BYTES:
            half = _round_up((rows + 1) // 2, sub)
            if half < rows:
                tr = half
    else:
        tr = target_rows        # multiple of `sub`; cdiv grid masks the ragged edge

    grid = (pl.cdiv(rows, tr),)
    return pl.pallas_call(
        _gelu_kernel,
        out_shape=jax.ShapeDtypeStruct((rows, cols), dtype),
        grid_spec=pltpu.PrefetchScalarGridSpec(
            num_scalar_prefetch=0,
            grid=grid,
            # TODO(synk): if an xprof trace on v7x shows exposed input DMA with the
            # bigger tiles, sweep pipeline_mode=pl.Buffered(3) on this in_spec.
            in_specs=[pl.BlockSpec((tr, cols), lambda i: (i, 0))],
            out_specs=pl.BlockSpec((tr, cols), lambda i: (i, 0)),
        ),
        compiler_params=_compiler_params(),
        input_output_aliases={0: 0} if donate else {},
    )(x2d)


def _call_single_block(x2d, *, donate=False):
    """One-block call for ragged-but-small inputs presented as (1, n)."""
    rows, cols = x2d.shape
    return pl.pallas_call(
        _gelu_kernel,
        out_shape=jax.ShapeDtypeStruct((rows, cols), x2d.dtype),
        grid_spec=pltpu.PrefetchScalarGridSpec(
            num_scalar_prefetch=0,
            grid=(1,),
            in_specs=[pl.BlockSpec((rows, cols), lambda i: (0, 0))],
            out_specs=pl.BlockSpec((rows, cols), lambda i: (0, 0)),
        ),
        compiler_params=_compiler_params(),
        input_output_aliases={0: 0} if donate else {},
    )(x2d)


def gelu_pallas(x, *, donate=False):
    """Tanh-approximation GeLU computed in a Pallas TPU kernel.

    donate=True lets the output alias the input buffer (caller gives up `x`),
    avoiding a second full-size HBM allocation for this elementwise op.
    """
    orig_shape = x.shape
    n = x.size
    if n == 0:
        return x

    cols = _pick_cols(n)
    if cols is not None:
        # Fast path: free ravel/reshape into a lane-dense slab; zero extra traffic.
        out2d = _call_tiled_2d(x.reshape(n // cols, cols), donate=donate)
        return out2d.reshape(orig_shape)

    itemsize = jnp.dtype(x.dtype).itemsize
    if n * itemsize <= _SINGLE_BLOCK_BYTES:
        # Ragged but small: one (1, n) block, no pad / slice HBM passes.
        out2d = _call_single_block(x.reshape(1, n), donate=donate)
        return out2d.reshape(orig_shape)

    # TODO(synk): huge element counts that are not a multiple of 128 still pay a
    # pad + slice round trip (~3x HBM traffic); rare for NN-shaped tensors.
    pad = (-n) % _LANE
    x_flat = jnp.pad(x.reshape(-1), (0, pad))
    cols = _pick_cols(n + pad)
    out2d = _call_tiled_2d(x_flat.reshape(-1, cols), donate=True)
    return out2d.reshape(-1)[:n].reshape(orig_shape)


def _gelu_ref(x):
    xf = x.astype(jnp.float32)
    y = 0.5 * xf * (1.0 + jnp.tanh(_C1 * (xf + 0.044715 * xf ** 3)))
    return y.astype(x.dtype)


if __name__ == "__main__":
    # Elementwise activation; NCHW-like small input.
    x = jax.random.normal(jax.random.PRNGKey(0), (2, 4, 16, 16), dtype=jnp.float32)
    out = jax.block_until_ready(gelu_pallas(x))
    ref = _gelu_ref(x)
    assert out.shape == x.shape and out.dtype == x.dtype
    assert jnp.allclose(out, ref, atol=1e-5, rtol=1e-5), "fast-path mismatch"

    # Ragged element count: exercises the single-block no-pad/no-slice path.
    x2 = jax.random.normal(jax.random.PRNGKey(1), (3, 5, 7), dtype=jnp.float32)
    out2 = jax.block_until_ready(gelu_pallas(x2))
    assert jnp.allclose(out2, _gelu_ref(x2), atol=1e-5, rtol=1e-5), "ragged mismatch"

    # bf16 input: exercises dtype-aware sublane rounding (f32 internal math).
    x3 = jax.random.normal(jax.random.PRNGKey(2), (8, 32, 128), dtype=jnp.bfloat16)
    out3 = jax.block_until_ready(gelu_pallas(x3))
    assert out3.shape == x3.shape and out3.dtype == jnp.bfloat16
    assert jnp.allclose(out3.astype(jnp.float32), _gelu_ref(x3).astype(jnp.float32),
                        atol=2e-2, rtol=2e-2), "bf16 mismatch"

    print("KERNEL_OK")
</pallas_src>

<mosaic_0001>
module attributes {stable_mosaic.version = 11 : i64} {
  func.func @_gelu_kernel(%arg0: i32, %arg1: memref<1x2048xf32, #tpu.memory_space<vmem>>, %arg2: memref<1x2048xf32, #tpu.memory_space<vmem>>) attributes {dimension_semantics = [#tpu.dimension_semantics<parallel>], iteration_bounds = array<i64: 1>, scalar_prefetch = 0 : i64, scratch_operands = 0 : i64, tpu.core_type = #tpu.core_type<tc>, window_params = [{transform_indices = @transform_0, window_bounds = array<i64: 1, 2048>}, {transform_indices = @transform_1, window_bounds = array<i64: 1, 2048>}]} {
    %c0 = arith.constant 0 : index
    %c0_0 = arith.constant 0 : index
    %0 = vector.load %arg1[%c0, %c0_0] : memref<1x2048xf32, #tpu.memory_space<vmem>>, vector<1x2048xf32>
    %1 = arith.mulf %0, %0 : vector<1x2048xf32>
    %cst = arith.constant 0.0356774069 : f32
    %2 = vector.broadcast %cst : f32 to vector<1x2048xf32>
    %3 = arith.mulf %2, %1 : vector<1x2048xf32>
    %cst_1 = arith.constant 0.797884583 : f32
    %4 = vector.broadcast %cst_1 : f32 to vector<1x2048xf32>
    %5 = arith.addf %4, %3 : vector<1x2048xf32>
    %6 = arith.mulf %0, %5 : vector<1x2048xf32>
    %7 = math.tanh %6 : vector<1x2048xf32>
    %cst_2 = arith.constant 5.000000e-01 : f32
    %8 = vector.broadcast %cst_2 : f32 to vector<1x2048xf32>
    %9 = arith.mulf %8, %7 : vector<1x2048xf32>
    %cst_3 = arith.constant 5.000000e-01 : f32
    %10 = vector.broadcast %cst_3 : f32 to vector<1x2048xf32>
    %11 = arith.addf %10, %9 : vector<1x2048xf32>
    %12 = arith.mulf %0, %11 : vector<1x2048xf32>
    %c0_4 = arith.constant 0 : index
    %c0_5 = arith.constant 0 : index
    %13 = vector.load %arg2[%c0_4, %c0_5] : memref<1x2048xf32, #tpu.memory_space<vmem>>, vector<1x2048xf32>
    tpu.vector_store %arg2[%c0_4, %c0_5], %12 {strides = array<i32>} : memref<1x2048xf32, #tpu.memory_space<vmem>>, vector<1x2048xf32>,
    return
  }
  func.func @transform_0(%arg0: i32) -> (i32, i32) {
    %c0_i32 = arith.constant 0 : i32
    %c0_i32_0 = arith.constant 0 : i32
    return %arg0, %c0_i32 : i32, i32
  }
  func.func @transform_1(%arg0: i32) -> (i32, i32) {
    %c0_i32 = arith.constant 0 : i32
    %c0_i32_0 = arith.constant 0 : i32
    return %arg0, %c0_i32 : i32, i32
  }
}

</mosaic_0001>

<bundles_post_ra>
// kernel: tpu_custom_call.1
= control target key start
LH: loop header
LB: loop body
LE: loop exit
PB: predicated region body
PF: predicated region fallthrough
CT: control target
= control target key end

     0   :  { %6 = vsyncpa [#allocation3], 0  ;;  %s136_s0 = inlined_call_operand.hbm [shape: f32[1,2048], index: 0, kind: input, shape index: {}]   ;;  %s137_s1 = inlined_call_operand.hbm [shape: f32[1,2048], index: 1, kind: output, shape index: {}]  }
   0x1   :  { %7 = vsyncpa [#allocation4], 0  ;;  %s13_s8 = sshll.u32 %s136_s0, 4  ;;  %s118_s9 = smov [#allocation2]   ;;  %s14_s8 = int_to_ptr.hbm [resolvable:$true] %s13_s8 }
   0x2   :  { %s15_s10 = sshll.u32 %s118_s9, 4  ;;  %s16_s10 = int_to_ptr.vmem [resolvable:$true] %s15_s10 }
   0x3   :  { %18 = dma.hbm_to_vmem [thread:$0]  %s14_s8, 256, %s16_s10, [#allocation3]  }
   0x4   :  { %114 = dma.done.wait [#allocation3], 256  }
   0x5   :  { %115 = vsyncadd [#allocation3], 4294967040  ;;  %v23_v0 = vld [vmem:[#allocation2] sm:$0xff]  ;;  %v24_v1 = vld [vmem:[#allocation2 + $0x8] sm:$0xff]  ;;  %s119_s0 = smov [#allocation5]   ;;  %s50_s14 = sshll.u32 %s137_s1, 4  ;;  %s51_s14 = int_to_ptr.hbm [resolvable:$true] %s50_s14 }
   0x6   :  { %v25_v2 = vmul.f32 %v23_v0, %v23_v0  ;;  %v26_v3 = vmul.f32 %v24_v1, %v24_v1  ;;  %s48_s11 = sshll.u32 %s119_s0, 4  ;;  %s49_s11 = int_to_ptr.vmem [resolvable:$true] %s48_s11 }
   0x8   :  { %v27_v4 = vmul.f32 0.035677407, %v25_v2  ;;  %v28_v5 = vmul.f32 0.035677407, %v26_v3 }
   0xa   :  { %v29_v6 = vadd.f32 0.7978846, %v27_v4  ;;  %v30_v7 = vadd.f32 0.7978846, %v28_v5 }
   0xc   :  { %v31_v8 = vmul.f32 %v29_v6, %v23_v0  ;;  %v32_v9 = vmul.f32 %v30_v7, %v24_v1 }
   0xe   :  { %62 = vtanh.f32 %v31_v8 }
   0xf   :  { %64 = vtanh.f32 %v32_v9 }
  0x14   :  { %v63_v10 = vpop.eup %62 }
  0x15   :  { %v65_v11 = vpop.eup %64  ;;  %v35_v12 = vmul.f32 0.5, %v63_v10 }
  0x16   :  { %v36_v13 = vmul.f32 0.5, %v65_v11 }
  0x17   :  { %v37_v14 = vadd.f32 0.5, %v35_v12 }
  0x18   :  { %v38_v15 = vadd.f32 0.5, %v36_v13 }
  0x19   :  { %v39_v16 = vmul.f32 %v37_v14, %v23_v0 }
  0x1a   :  { %v40_v17 = vmul.f32 %v38_v15, %v24_v1 }
  0x1b   :  { %41 = vst [vmem:[#allocation5] sm:$0xff] %v39_v16 }
  0x1c   :  { %42 = vst [vmem:[#allocation5 + $0x8] sm:$0xff] %v40_v17 }
  0x1d   :  { %53 = dma.vmem_to_hbm [thread:$0]  %s49_s11, 256, %s51_s14, [#allocation4]  }
  0x1e   :  { %116 = dma.done.wait [#allocation4], 256  }
  0x1f   :  { %117 = vsyncadd [#allocation4], 4294967040 }
  0x20   :  { %58 = vsyncpa [#allocation3], 1 }
  0x21   :  { %59 = vsyncpa [#allocation4], 1 }

</bundles_post_ra>
